<compile_context>
chip_gen: v6e
topology: v6e:2x2x1
jax: 0.10.0
libtpu: 0.0.40
codegen_flags: <defaults>
</compile_context>

<pallas_src>
import functools

import jax
import jax.numpy as jnp
from jax.experimental import pallas as pl
from jax.experimental.pallas import tpu as pltpu


def _round_up(x, m):
    return ((x + m - 1) // m) * m


def _tpu_vmem_and_defaults():
    """VMEM capacity + generation-aware max tile sizes (best effort)."""
    cap = 128 * 1024 * 1024
    tm, tn, tk = 512, 512, 512          # v6e/v7x class (256-wide MXU)
    try:
        info = pltpu.get_tpu_info()
        cap = int(getattr(info, "vmem_capacity_bytes", cap))
        ver = str(getattr(info, "chip_version", "")).lower()
        if "v5" in ver or "5e" in ver or "5p" in ver:
            # v5e: 4x128^2 MXU, much lower compute roofline -> 128/256-based tiles.
            tm, tn, tk = 256, 256, 512
    except Exception:
        pass
    return cap, tm, tn, tk


def _gated_linear_kernel(x_ref, wt_ref, b_ref, g1t_ref, bg1_ref, g2t_ref, bg2_ref,
                         o_ref, acc_ref, h_ref, hg_ref, *, tk, x_resident):
    # Grid: (i = batch tile [parallel], j = output tile, k = reduction tile).
    # INVARIANT: h_ref / hg_ref are written at j == 0 and reused for every
    # j > 0 of the same batch tile -> the j and k axes MUST stay "arbitrary"
    # (sequential).  Never mark j "parallel".
    j = pl.program_id(1)
    k = pl.program_id(2)
    nk = pl.num_programs(2)

    # --- init accumulators ---------------------------------------------------
    @pl.when(k == 0)
    def _():
        acc_ref[...] = jnp.zeros_like(acc_ref)

    @pl.when((j == 0) & (k == 0))
    def _():
        h_ref[...] = jnp.zeros_like(h_ref)

    # --- inner loop: pure MXU work -------------------------------------------
    if x_resident:
        # Whole (tm, in_pad) row slab resident in VMEM; slice current K chunk.
        x = x_ref[:, pl.ds(pl.multiple_of(k * tk, 128), tk)]
    else:
        x = x_ref[...]                                              # (tm, tk)

    acc_ref[...] += jnp.dot(x, wt_ref[...],
                            preferred_element_type=jnp.float32)     # (tm, tn)

    # Gate hidden depends only on the batch tile; accumulate it only once.
    @pl.when(j == 0)
    def _():
        h_ref[...] += jnp.dot(x, g1t_ref[...],
                              preferred_element_type=jnp.float32)   # (tm, gh)

    # --- finalize (VPU / EUP + one small MXU op) ------------------------------
    @pl.when((k == nk - 1) & (j == 0))
    def _():
        # Bias + ReLU + cast done once per batch tile; cached for all j > 0.
        hg_ref[...] = jnp.maximum(h_ref[...] + bg1_ref[...], 0.0).astype(hg_ref.dtype)

    @pl.when(k == nk - 1)
    def _():
        g = jnp.dot(hg_ref[...], g2t_ref[...],
                    preferred_element_type=jnp.float32)             # (tm, tn) f32
        gates = jax.nn.sigmoid(g + bg2_ref[...])
        out = acc_ref[...] + b_ref[...]
        o_ref[...] = (gates * out).astype(o_ref.dtype)


def make_gated_linear(weight, bias, g1_w, g1_b, g2_w, g2_b, *,
                      compute_dtype=jnp.bfloat16, tm=None, tn=None, tk=None,
                      x_resident=None):
    """Pre-packs (transpose/cast/pad) the weights ONCE and returns fwd(x)->y.

    weight: (out, in); g1_w: (gh, in); g2_w: (out, gh).
    tm/tn/tk are *maximum* tile sizes (default: generation-aware).
    """
    out_f, in_f = weight.shape
    gh = g1_w.shape[0]
    cd = jnp.dtype(compute_dtype)
    cd_b = cd.itemsize

    vmem_cap, tm_d, tn_d, tk_d = _tpu_vmem_and_defaults()
    tm_max = tm if tm is not None else tm_d
    tn_max = tn if tn is not None else tn_d
    tk_max = tk if tk is not None else tk_d

    # bf16 sublane packing wants 16-row granularity; f32 wants 8.
    batch_unit = 16 if cd == jnp.dtype(jnp.bfloat16) else 8

    gh_pad = _round_up(gh, 128)
    # TODO(synk): for gh_pad >~ 4-8K the un-tiled gate path (G1^T / G2^T tiles
    # and the (tm, gh_pad) scratches) should get its own reduction tiling.

    # Big lane-dense tiles; dims are padded UP to tile multiples (edge tiles may
    # be partially zero -- numerically free for this op).
    tn_ = min(_round_up(tn_max, 128), _round_up(out_f, 128))
    tk_ = min(_round_up(tk_max, 128), _round_up(in_f, 128))
    tm_cap = _round_up(max(tm_max, batch_unit), batch_unit)

    x_res = True if x_resident is None else bool(x_resident)

    def _need_bytes(tm_b, tn_b, tk_b, x_res_b):
        in_pad_b = _round_up(max(in_f, tk_b), tk_b)
        n = 2 * tm_b * (in_pad_b if x_res_b else tk_b) * cd_b       # x (dbl buf)
        n += 2 * tk_b * tn_b * cd_b                                 # W^T
        n += 2 * tk_b * gh_pad * cd_b                               # G1^T
        n += 2 * gh_pad * tn_b * cd_b                               # G2^T
        n += 2 * 8 * (2 * tn_b + gh_pad) * 4                        # bias rows
        n += 2 * tm_b * tn_b * 4                                    # output block
        n += tm_b * tn_b * 4                                        # f32 acc scratch
        n += tm_b * gh_pad * 4                                      # f32 gate-hidden acc
        n += tm_b * gh_pad * cd_b                                   # cached relu(h)
        return n

    # Shrink tiles (tk -> tn -> tm -> drop resident x) until the budget fits.
    budget = int(vmem_cap * 0.6)
    while _need_bytes(tm_cap, tn_, tk_, x_res) > budget:
        if tk_ > 128:
            tk_ = max(128, _round_up(tk_ // 2, 128))
        elif tn_ > 128:
            tn_ = max(128, _round_up(tn_ // 2, 128))
        elif tm_cap > batch_unit:
            tm_cap = max(batch_unit, _round_up(tm_cap // 2, batch_unit))
        elif x_res and x_resident is None:
            x_res = False
        else:
            break  # best effort

    in_pad = _round_up(max(in_f, tk_), tk_)
    out_pad = _round_up(max(out_f, tn_), tn_)

    # ---- one-time weight repack (hoisted out of the per-call hot path) -------
    wt_p = jnp.pad(weight.T.astype(cd), ((0, in_pad - in_f), (0, out_pad - out_f)))
    g1t_p = jnp.pad(g1_w.T.astype(cd), ((0, in_pad - in_f), (0, gh_pad - gh)))
    g2t_p = jnp.pad(g2_w.T.astype(cd), ((0, gh_pad - gh), (0, out_pad - out_f)))
    # Biases stay float32 (added in the f32 finalize path).
    b_p = jnp.pad(bias.astype(jnp.float32).reshape(1, -1), ((0, 0), (0, out_pad - out_f)))
    bg1_p = jnp.pad(g1_b.astype(jnp.float32).reshape(1, -1), ((0, 0), (0, gh_pad - gh)))
    bg2_p = jnp.pad(g2_b.astype(jnp.float32).reshape(1, -1), ((0, 0), (0, out_pad - out_f)))

    @jax.jit
    def fwd(x):
        B = x.shape[0]
        out_dtype = x.dtype

        b_unit = _round_up(B, batch_unit)
        tm_ = min(tm_cap, b_unit)
        # Megacore (v7x has 2 TCs): prefer >= 2 batch tiles when batch allows.
        if b_unit // tm_ < 2 and b_unit >= 2 * batch_unit:
            tm_ = max(batch_unit, _round_up((b_unit + 1) // 2, batch_unit))
        b_pad = _round_up(b_unit, tm_)

        x_p = jnp.pad(x.astype(cd), ((0, b_pad - B), (0, in_pad - in_f)))

        grid = (b_pad // tm_, out_pad // tn_, in_pad // tk_)

        if x_res:
            x_spec = pl.BlockSpec((tm_, in_pad), lambda i, j, k: (i, 0))
        else:
            x_spec = pl.BlockSpec((tm_, tk_), lambda i, j, k: (i, k))

        # G1^T is only consumed when j == 0; freeze its block index for j > 0 so
        # Pallas skips re-fetching a tile the kernel never reads.
        g1_spec = pl.BlockSpec((tk_, gh_pad),
                               lambda i, j, k: (jnp.where(j == 0, k, 0), 0))

        need = _need_bytes(tm_, tn_, tk_, x_res)
        vmem_limit = min(int(vmem_cap * 0.85), max(need + (8 << 20), 32 << 20))

        out = pl.pallas_call(
            functools.partial(_gated_linear_kernel, tk=tk_, x_resident=x_res),
            out_shape=jax.ShapeDtypeStruct((b_pad, out_pad), out_dtype),
            grid_spec=pltpu.PrefetchScalarGridSpec(
                num_scalar_prefetch=0,
                grid=grid,
                in_specs=[
                    x_spec,                                                # x
                    pl.BlockSpec((tk_, tn_), lambda i, j, k: (k, j)),      # W^T
                    pl.BlockSpec((1, tn_), lambda i, j, k: (0, j)),        # bias
                    g1_spec,                                               # G1^T
                    pl.BlockSpec((1, gh_pad), lambda i, j, k: (0, 0)),     # gate b1
                    pl.BlockSpec((gh_pad, tn_), lambda i, j, k: (0, j)),   # G2^T
                    pl.BlockSpec((1, tn_), lambda i, j, k: (0, j)),        # gate b2
                ],
                out_specs=pl.BlockSpec((tm_, tn_), lambda i, j, k: (i, j)),
                scratch_shapes=[
                    pltpu.VMEM((tm_, tn_), jnp.float32),     # main-linear acc
                    pltpu.VMEM((tm_, gh_pad), jnp.float32),  # gate-hidden acc
                    pltpu.VMEM((tm_, gh_pad), cd),           # cached relu(h + b_g1)
                ]),
            compiler_params=pltpu.CompilerParams(
                # j/k MUST stay "arbitrary": gate-hidden scratch is reused across j.
                dimension_semantics=("parallel", "arbitrary", "arbitrary"),
                vmem_limit_bytes=vmem_limit),
        )(x_p, wt_p, b_p, g1t_p, bg1_p, g2t_p, bg2_p)

        return out[:B, :out_f]

    return fwd


def gated_linear(x, weight, bias, g1_w, g1_b, g2_w, g2_b, **kwargs):
    """One-shot convenience wrapper (packs weights on every call)."""
    return make_gated_linear(weight, bias, g1_w, g1_b, g2_w, g2_b, **kwargs)(x)


def gated_linear_ref(x, weight, bias, g1_w, g1_b, g2_w, g2_b):
    h = jnp.maximum(x @ g1_w.T + g1_b, 0.0)
    gates = jax.nn.sigmoid(h @ g2_w.T + g2_b)
    out = x @ weight.T + bias
    return gates * out


if __name__ == "__main__":
    def make_params(key, in_f, out_f, gh):
        k_x, k_w, k_g1w, k_g1b, k_g2w, k_g2b = jax.random.split(key, 6)
        weight = jax.random.normal(k_w, (out_f, in_f), dtype=jnp.float32) * 0.1
        bias = jnp.zeros((out_f,), dtype=jnp.float32)
        g1_w = jax.random.normal(k_g1w, (gh, in_f), dtype=jnp.float32) * 0.1
        g1_b = jax.random.normal(k_g1b, (gh,), dtype=jnp.float32) * 0.01
        g2_w = jax.random.normal(k_g2w, (out_f, gh), dtype=jnp.float32) * 0.1
        g2_b = jax.random.normal(k_g2b, (out_f,), dtype=jnp.float32) * 0.01
        return k_x, (weight, bias, g1_w, g1_b, g2_w, g2_b)

    # --- test 1: module's native small shapes, f32 compute (tight check) ------
    B, in_f, out_f, gh = 8, 32, 32, 16
    k_x, params = make_params(jax.random.PRNGKey(0), in_f, out_f, gh)
    x = jax.random.normal(k_x, (B, in_f), dtype=jnp.float32)
    ref = gated_linear_ref(x, *params)

    out = jax.block_until_ready(gated_linear(x, *params, compute_dtype=jnp.float32))
    assert out.shape == (B, out_f)
    assert jnp.allclose(out, ref, atol=1e-4, rtol=1e-4)

    # --- test 2: bf16 compute path (MXU-native; batch padded to 16) -----------
    out_bf = jax.block_until_ready(gated_linear(x, *params, compute_dtype=jnp.bfloat16))
    assert out_bf.shape == (B, out_f)
    assert jnp.allclose(out_bf, ref, atol=5e-2, rtol=5e-2)

    # --- test 3: multi-tile grid (i=2, j=2, k=3), padded edge tiles,
    #             resident-x slab, gate-hidden reuse across j, pre-packed weights
    B2, in2, out2, gh2 = 64, 320, 200, 16
    k_x2, params2 = make_params(jax.random.PRNGKey(1), in2, out2, gh2)
    x2 = jax.random.normal(k_x2, (B2, in2), dtype=jnp.float32)
    fwd2 = make_gated_linear(*params2, compute_dtype=jnp.float32,
                             tm=32, tn=128, tk=128)
    out2_ = jax.block_until_ready(fwd2(x2))
    ref2 = gated_linear_ref(x2, *params2)
    assert out2_.shape == (B2, out2)
    assert jnp.allclose(out2_, ref2, atol=2e-2, rtol=2e-2)

    # --- test 4: streamed-x fallback path (x_resident=False) ------------------
    fwd3 = make_gated_linear(*params2, compute_dtype=jnp.float32,
                             tm=32, tn=128, tk=128, x_resident=False)
    out3_ = jax.block_until_ready(fwd3(x2))
    assert jnp.allclose(out3_, ref2, atol=2e-2, rtol=2e-2)

    print("KERNEL_OK")
</pallas_src>

<mosaic_0001>
module attributes {stable_mosaic.version = 11 : i64} {
  func.func @_gated_linear_kernel(%arg0: i32, %arg1: i32, %arg2: i32, %arg3: memref<8x128xf32, #tpu.memory_space<vmem>>, %arg4: memref<128x128xf32, #tpu.memory_space<vmem>>, %arg5: memref<1x128xf32, #tpu.memory_space<vmem>>, %arg6: memref<128x128xf32, #tpu.memory_space<vmem>>, %arg7: memref<1x128xf32, #tpu.memory_space<vmem>>, %arg8: memref<128x128xf32, #tpu.memory_space<vmem>>, %arg9: memref<1x128xf32, #tpu.memory_space<vmem>>, %arg10: memref<8x128xf32, #tpu.memory_space<vmem>>, %arg11: memref<8x128xf32, #tpu.memory_space<vmem>>, %arg12: memref<8x128xf32, #tpu.memory_space<vmem>>, %arg13: memref<8x128xf32, #tpu.memory_space<vmem>>) attributes {dimension_semantics = [#tpu.dimension_semantics<parallel>, #tpu.dimension_semantics<arbitrary>, #tpu.dimension_semantics<arbitrary>], iteration_bounds = array<i64: 1, 1, 1>, scalar_prefetch = 0 : i64, scratch_operands = 3 : i64, tpu.core_type = #tpu.core_type<tc>, window_params = [{transform_indices = @transform_0, window_bounds = array<i64: 8, 128>}, {transform_indices = @transform_1, window_bounds = array<i64: 128, 128>}, {transform_indices = @transform_2, window_bounds = array<i64: 1, 128>}, {transform_indices = @transform_3, window_bounds = array<i64: 128, 128>}, {pipeline_mode = #tpu.pipeline_mode<synchronous>, transform_indices = @transform_4, window_bounds = array<i64: 1, 128>}, {transform_indices = @transform_5, window_bounds = array<i64: 128, 128>}, {transform_indices = @transform_6, window_bounds = array<i64: 1, 128>}, {transform_indices = @transform_7, window_bounds = array<i64: 8, 128>}]} {
    %c0_i32 = arith.constant 0 : i32
    %0 = arith.cmpi eq, %arg2, %c0_i32 : i32
    %1 = arith.extui %0 : i1 to i32
    %c0_i32_0 = arith.constant 0 : i32
    %2 = arith.cmpi ne, %1, %c0_i32_0 : i32
    scf.if %2 {
      %cst_17 = arith.constant 0.000000e+00 : f32
      %28 = vector.broadcast %cst_17 : f32 to vector<8x128xf32>
      %c0_18 = arith.constant 0 : index
      %c0_19 = arith.constant 0 : index
      %29 = vector.load %arg11[%c0_18, %c0_19] : memref<8x128xf32, #tpu.memory_space<vmem>>, vector<8x128xf32>
      tpu.vector_store %arg11[%c0_18, %c0_19], %28 {strides = array<i32>} : memref<8x128xf32, #tpu.memory_space<vmem>>, vector<8x128xf32>,
    } else {
    }
    %c0_i32_1 = arith.constant 0 : i32
    %3 = arith.cmpi eq, %arg1, %c0_i32_1 : i32
    %c0_i32_2 = arith.constant 0 : i32
    %4 = arith.cmpi eq, %arg2, %c0_i32_2 : i32
    %5 = arith.andi %3, %4 : i1
    %6 = arith.extui %5 : i1 to i32
    %c0_i32_3 = arith.constant 0 : i32
    %7 = arith.cmpi ne, %6, %c0_i32_3 : i32
    scf.if %7 {
      %cst_17 = arith.constant 0.000000e+00 : f32
      %28 = vector.broadcast %cst_17 : f32 to vector<8x128xf32>
      %c0_18 = arith.constant 0 : index
      %c0_19 = arith.constant 0 : index
      %29 = vector.load %arg12[%c0_18, %c0_19] : memref<8x128xf32, #tpu.memory_space<vmem>>, vector<8x128xf32>
      tpu.vector_store %arg12[%c0_18, %c0_19], %28 {strides = array<i32>} : memref<8x128xf32, #tpu.memory_space<vmem>>, vector<8x128xf32>,
    } else {
    }
    %c128_i32 = arith.constant 128 : i32
    %8 = arith.muli %arg2, %c128_i32 : i32
    %9 = tpu.assume_multiple %8, 128 : i32
    %c0 = arith.constant 0 : index
    %10 = arith.index_cast %9 : i32 to index
    %11 = vector.load %arg3[%c0, %10] : memref<8x128xf32, #tpu.memory_space<vmem>>, vector<8x128xf32>
    %c0_4 = arith.constant 0 : index
    %c0_5 = arith.constant 0 : index
    %12 = vector.load %arg11[%c0_4, %c0_5] : memref<8x128xf32, #tpu.memory_space<vmem>>, vector<8x128xf32>
    %c0_6 = arith.constant 0 : index
    %c0_7 = arith.constant 0 : index
    %13 = vector.load %arg4[%c0_6, %c0_7] : memref<128x128xf32, #tpu.memory_space<vmem>>, vector<128x128xf32>
    %cst = arith.constant dense<0.000000e+00> : vector<8x128xf32>
    %14 = tpu.matmul %11, %13, %cst {dimension_numbers = #tpu.dot_dimension_numbers<[1], [0], [0], [1], [0, 0, 1, 1], [], []>} : vector<8x128xf32>, vector<128x128xf32>, vector<8x128xf32> -> vector<8x128xf32>
    %15 = arith.addf %12, %14 : vector<8x128xf32>
    %c0_8 = arith.constant 0 : index
    %c0_9 = arith.constant 0 : index
    %16 = vector.load %arg11[%c0_8, %c0_9] : memref<8x128xf32, #tpu.memory_space<vmem>>, vector<8x128xf32>
    tpu.vector_store %arg11[%c0_8, %c0_9], %15 {strides = array<i32>} : memref<8x128xf32, #tpu.memory_space<vmem>>, vector<8x128xf32>,
    %c0_i32_10 = arith.constant 0 : i32
    %17 = arith.cmpi eq, %arg1, %c0_i32_10 : i32
    %18 = arith.extui %17 : i1 to i32
    %c0_i32_11 = arith.constant 0 : i32
    %19 = arith.cmpi ne, %18, %c0_i32_11 : i32
    scf.if %19 {
      %c0_17 = arith.constant 0 : index
      %c0_18 = arith.constant 0 : index
      %28 = vector.load %arg12[%c0_17, %c0_18] : memref<8x128xf32, #tpu.memory_space<vmem>>, vector<8x128xf32>
      %c0_19 = arith.constant 0 : index
      %c0_20 = arith.constant 0 : index
      %29 = vector.load %arg6[%c0_19, %c0_20] : memref<128x128xf32, #tpu.memory_space<vmem>>, vector<128x128xf32>
      %cst_21 = arith.constant dense<0.000000e+00> : vector<8x128xf32>
      %30 = tpu.matmul %11, %29, %cst_21 {dimension_numbers = #tpu.dot_dimension_numbers<[1], [0], [0], [1], [0, 0, 1, 1], [], []>} : vector<8x128xf32>, vector<128x128xf32>, vector<8x128xf32> -> vector<8x128xf32>
      %31 = arith.addf %28, %30 : vector<8x128xf32>
      %c0_22 = arith.constant 0 : index
      %c0_23 = arith.constant 0 : index
      %32 = vector.load %arg12[%c0_22, %c0_23] : memref<8x128xf32, #tpu.memory_space<vmem>>, vector<8x128xf32>
      tpu.vector_store %arg12[%c0_22, %c0_23], %31 {strides = array<i32>} : memref<8x128xf32, #tpu.memory_space<vmem>>, vector<8x128xf32>,
    } else {
    }
    %c0_i32_12 = arith.constant 0 : i32
    %20 = arith.cmpi eq, %arg2, %c0_i32_12 : i32
    %c0_i32_13 = arith.constant 0 : i32
    %21 = arith.cmpi eq, %arg1, %c0_i32_13 : i32
    %22 = arith.andi %20, %21 : i1
    %23 = arith.extui %22 : i1 to i32
    %c0_i32_14 = arith.constant 0 : i32
    %24 = arith.cmpi ne, %23, %c0_i32_14 : i32
    scf.if %24 {
      %c0_17 = arith.constant 0 : index
      %c0_18 = arith.constant 0 : index
      %28 = vector.load %arg12[%c0_17, %c0_18] : memref<8x128xf32, #tpu.memory_space<vmem>>, vector<8x128xf32>
      %c0_19 = arith.constant 0 : index
      %c0_20 = arith.constant 0 : index
      %29 = vector.load %arg7[%c0_19, %c0_20] : memref<1x128xf32, #tpu.memory_space<vmem>>, vector<1x128xf32>
      %30 = vector.broadcast %29 : vector<1x128xf32> to vector<8x128xf32>
      %31 = arith.addf %28, %30 : vector<8x128xf32>
      %cst_21 = arith.constant 0.000000e+00 : f32
      %32 = vector.broadcast %cst_21 : f32 to vector<8x128xf32>
      %33 = arith.maximumf %31, %32 : vector<8x128xf32>
      %c0_22 = arith.constant 0 : index
      %c0_23 = arith.constant 0 : index
      %34 = vector.load %arg13[%c0_22, %c0_23] : memref<8x128xf32, #tpu.memory_space<vmem>>, vector<8x128xf32>
      tpu.vector_store %arg13[%c0_22, %c0_23], %33 {strides = array<i32>} : memref<8x128xf32, #tpu.memory_space<vmem>>, vector<8x128xf32>,
    } else {
    }
    %c0_i32_15 = arith.constant 0 : i32
    %25 = arith.cmpi eq, %arg2, %c0_i32_15 : i32
    %26 = arith.extui %25 : i1 to i32
    %c0_i32_16 = arith.constant 0 : i32
    %27 = arith.cmpi ne, %26, %c0_i32_16 : i32
    scf.if %27 {
      %c0_17 = arith.constant 0 : index
      %c0_18 = arith.constant 0 : index
      %28 = vector.load %arg13[%c0_17, %c0_18] : memref<8x128xf32, #tpu.memory_space<vmem>>, vector<8x128xf32>
      %c0_19 = arith.constant 0 : index
      %c0_20 = arith.constant 0 : index
      %29 = vector.load %arg8[%c0_19, %c0_20] : memref<128x128xf32, #tpu.memory_space<vmem>>, vector<128x128xf32>
      %cst_21 = arith.constant dense<0.000000e+00> : vector<8x128xf32>
      %30 = tpu.matmul %28, %29, %cst_21 {dimension_numbers = #tpu.dot_dimension_numbers<[1], [0], [0], [1], [0, 0, 1, 1], [], []>} : vector<8x128xf32>, vector<128x128xf32>, vector<8x128xf32> -> vector<8x128xf32>
      %c0_22 = arith.constant 0 : index
      %c0_23 = arith.constant 0 : index
      %31 = vector.load %arg9[%c0_22, %c0_23] : memref<1x128xf32, #tpu.memory_space<vmem>>, vector<1x128xf32>
      %32 = vector.broadcast %31 : vector<1x128xf32> to vector<8x128xf32>
      %33 = arith.addf %30, %32 : vector<8x128xf32>
      %34 = arith.negf %33 : vector<8x128xf32>
      %35 = math.exp %34 : vector<8x128xf32>
      %cst_24 = arith.constant 1.000000e+00 : f32
      %36 = vector.broadcast %cst_24 : f32 to vector<8x128xf32>
      %37 = arith.addf %36, %35 : vector<8x128xf32>
      %38 = arith.divf %36, %37 : vector<8x128xf32>
      %c0_25 = arith.constant 0 : index
      %c0_26 = arith.constant 0 : index
      %39 = vector.load %arg11[%c0_25, %c0_26] : memref<8x128xf32, #tpu.memory_space<vmem>>, vector<8x128xf32>
      %c0_27 = arith.constant 0 : index
      %c0_28 = arith.constant 0 : index
      %40 = vector.load %arg5[%c0_27, %c0_28] : memref<1x128xf32, #tpu.memory_space<vmem>>, vector<1x128xf32>
      %41 = vector.broadcast %40 : vector<1x128xf32> to vector<8x128xf32>
      %42 = arith.addf %39, %41 : vector<8x128xf32>
      %43 = arith.mulf %38, %42 : vector<8x128xf32>
      %c0_29 = arith.constant 0 : index
      %c0_30 = arith.constant 0 : index
      %44 = vector.load %arg10[%c0_29, %c0_30] : memref<8x128xf32, #tpu.memory_space<vmem>>, vector<8x128xf32>
      tpu.vector_store %arg10[%c0_29, %c0_30], %43 {strides = array<i32>} : memref<8x128xf32, #tpu.memory_space<vmem>>, vector<8x128xf32>,
    } else {
    }
    return
  }
  func.func @transform_0(%arg0: i32, %arg1: i32, %arg2: i32) -> (i32, i32) {
    %c0_i32 = arith.constant 0 : i32
    %c0_i32_0 = arith.constant 0 : i32
    return %arg0, %c0_i32 : i32, i32
  }
  func.func @transform_1(%arg0: i32, %arg1: i32, %arg2: i32) -> (i32, i32) {
    %c0_i32 = arith.constant 0 : i32
    return %arg2, %arg1 : i32, i32
  }
  func.func @transform_2(%arg0: i32, %arg1: i32, %arg2: i32) -> (i32, i32) {
    %c0_i32 = arith.constant 0 : i32
    %c0_i32_0 = arith.constant 0 : i32
    return %c0_i32, %arg1 : i32, i32
  }
  func.func @transform_3(%arg0: i32, %arg1: i32, %arg2: i32) -> (i32, i32) {
    %c0_i32 = arith.constant 0 : i32
    %0 = arith.cmpi eq, %arg1, %c0_i32 : i32
    %c0_i32_0 = arith.constant 0 : i32
    %1 = arith.select %0, %arg2, %c0_i32_0 : i32
    %c0_i32_1 = arith.constant 0 : i32
    %c0_i32_2 = arith.constant 0 : i32
    return %1, %c0_i32_1 : i32, i32
  }
  func.func @transform_4(%arg0: i32, %arg1: i32, %arg2: i32) -> (i32, i32) {
    %c0_i32 = arith.constant 0 : i32
    %c0_i32_0 = arith.constant 0 : i32
    %c0_i32_1 = arith.constant 0 : i32
    return %c0_i32, %c0_i32_0 : i32, i32
  }
  func.func @transform_5(%arg0: i32, %arg1: i32, %arg2: i32) -> (i32, i32) {
    %c0_i32 = arith.constant 0 : i32
    %c0_i32_0 = arith.constant 0 : i32
    return %c0_i32, %arg1 : i32, i32
  }
  func.func @transform_6(%arg0: i32, %arg1: i32, %arg2: i32) -> (i32, i32) {
    %c0_i32 = arith.constant 0 : i32
    %c0_i32_0 = arith.constant 0 : i32
    return %c0_i32, %arg1 : i32, i32
  }
  func.func @transform_7(%arg0: i32, %arg1: i32, %arg2: i32) -> (i32, i32) {
    %c0_i32 = arith.constant 0 : i32
    return %arg0, %arg1 : i32, i32
  }
}

</mosaic_0001>

<bundles_post_ra>
// kernel: fwd.1
= control target key start
LH: loop header
LB: loop body
LE: loop exit
PB: predicated region body
PF: predicated region fallthrough
CT: control target
= control target key end

     0   :  { %12 = vsyncpa [#allocation6], 0  ;;  %s803_s0 = inlined_call_operand.vmem [shape: f32[8,128], index: 0, kind: input, shape index: {}]   ;;  %s804_s1 = inlined_call_operand.hbm [shape: f32[128,128], index: 1, kind: input, shape index: {}]   ;;  %s805_s2 = inlined_call_operand.vmem [shape: f32[1,128], index: 2, kind: input, shape index: {}]   ;;  %s806_s3 = inlined_call_operand.hbm [shape: f32[128,128], index: 3, kind: input, shape index: {}]   ;;  %s807_s4 = inlined_call_operand.vmem [shape: f32[1,128], index: 4, kind: input, shape index: {}]   ;;  %s808_s5 = inlined_call_operand.hbm [shape: f32[128,128], index: 5, kind: input, shape index: {}]   ;;  %s809_s6 = inlined_call_operand.vmem [shape: f32[1,128], index: 6, kind: input, shape index: {}]   ;;  %s810_s7 = inlined_call_operand.hbm [shape: f32[8,128], index: 7, kind: output, shape index: {}]  }
   0x1   :  { %13 = vsyncpa [#allocation9], 0 }
   0x2   :  { %14 = vsyncpa [#allocation7], 0  ;;  %s677_s24 = smov [#allocation8]   ;;  %s678_s26 = smov [#allocation5]  }
   0x3   :  { %s41_s25 = sshll.u32 %s677_s24, 4  ;;  %s22_s27 = sshll.u32 %s678_s26, 4  ;;  %s42_s25 = int_to_ptr.vmem [resolvable:$true] %s41_s25  ;;  %s23_s27 = int_to_ptr.vmem [resolvable:$true] %s22_s27 }
   0x4   :  { %s599_s28 = scalar_lea.vmem %s42_s25, 2048  ;;  %p604_p1 = scmp.lt.s32.totalorder %s42_s25, %s42_s25 }
   0x5   :  { %p600_p0 = scmp.ne.s32.totalorder %s42_s25, %s599_s28  ;;  %p605_p2 = scmp.lt.s32.totalorder %s599_s28, %s599_s28 }
   0x7   :  { %p606_p3 = por %p605_p2, %p604_p1 }
   0x9   :  { %p607_p4 = pnand %p606_p3, %p600_p0 }
   0xb   :  { %610 = shalt.err (!%p607_p4)
}
   0xc   :  { %s679_s29 = smov 128   ;;  %s680_s30 = smov 8  }
   0xd   :  { %47 = dma.hbm_to_vmem [thread:$0]  %s806_s3, 2048, %s42_s25, [#allocation9], %s679_s29, %s679_s29, %s680_s30  }
   0xe   :  { %s619_s10 = scalar_lea.vmem %s23_s27, 2048  ;;  %p624_p6 = scmp.lt.s32.totalorder %s23_s27, %s23_s27 }
   0xf   :  { %p620_p5 = scmp.ne.s32.totalorder %s23_s27, %s619_s10  ;;  %p625_p7 = scmp.lt.s32.totalorder %s619_s10, %s619_s10 }
  0x11   :  { %p626_p8 = por %p625_p7, %p624_p6 }
  0x13   :  { %p627_p9 = pnand %p626_p8, %p620_p5 }
  0x15   :  { %630 = shalt.err (!%p627_p9)
}
  0x16   :  { %28 = dma.hbm_to_vmem [thread:$0]  %s804_s1, 2048, %s23_s27, [#allocation6], %s679_s29, %s679_s29, %s680_s30  }
  0x17   :  { %s681_s13 = smov [#allocation10]  }
  0x18   :  { %s55_s14 = sshll.u32 %s681_s13, 4  ;;  %s56_s14 = int_to_ptr.vmem [resolvable:$true] %s55_s14 }
  0x19   :  { %s639_s15 = scalar_lea.vmem %s56_s14, 2048  ;;  %p644_p11 = scmp.lt.s32.totalorder %s56_s14, %s56_s14 }
  0x1a   :  { %p640_p10 = scmp.ne.s32.totalorder %s56_s14, %s639_s15  ;;  %p645_p12 = scmp.lt.s32.totalorder %s639_s15, %s639_s15 }
  0x1c   :  { %p646_p13 = por %p645_p12, %p644_p11 }
  0x1e   :  { %p647_p0 = pnand %p646_p13, %p640_p10 }
  0x20   :  { %650 = shalt.err (!%p647_p0)
}
  0x21   :  { %61 = dma.hbm_to_vmem [thread:$0]  %s808_s5, 2048, %s56_s14, [#allocation9], %s679_s29, %s679_s29, %s680_s30  }
  0x22   :  { %671 = dma.done.wait [#allocation6], 2048  }
  0x23   :  { %672 = vsyncadd [#allocation6], 4294965248 }
  0x24   :  { %673 = dma.done.wait [#allocation9], 4096  }
  0x25   :  { %674 = vsyncadd [#allocation9], 4294963200  ;;  %v682_v0 = vmov 0.0   ;;  %vm683_vm0 = vmmov 0   ;;  %v200_v1 = vld [vmem:[#allocation8 + $0x78] sm:$0xff]  ;;  %v199_v2 = vld [vmem:[#allocation8 + $0x70] sm:$0xff] }
  0x26   :  { %509 = vmatprep.subr.mxu1 %v682_v0  ;;  %541 = vmatprep.mubr.msk.f32.mxu1 %vm683_vm0, %v682_v0  ;;  %v198_v3 = vld [vmem:[#allocation8 + $0x68] sm:$0xff]  ;;  %v197_v4 = vld [vmem:[#allocation8 + $0x60] sm:$0xff]  ;;  %v108_v5 = vld [vmem:[#allocation5 + $0x78] sm:$0xff]  ;;  %s684_s21 = smov [#allocation11]  }
  0x27   :  { %474 = vmatprep.subr.mxu0 %v682_v0  ;;  %506 = vmatprep.mubr.msk.f32.mxu0 %vm683_vm0, %v682_v0  ;;  %v196_v6 = vld [vmem:[#allocation8 + $0x58] sm:$0xff]  ;;  %v107_v7 = vld [vmem:[#allocation5 + $0x70] sm:$0xff]  ;;  %v106_v8 = vld [vmem:[#allocation5 + $0x68] sm:$0xff]  ;;  %s406_s22 = sshll.u32 %s684_s21, 4  ;;  %s407_s22 = int_to_ptr.vmem [resolvable:$true] %s406_s22 }
  0x28   :  { %510 = vmatpush3.msra.mxu1 %v200_v1  ;;  %475 = vmatpush3.msra.mxu0 %v108_v5  ;;  %v195_v9 = vld [vmem:[#allocation8 + $0x50] sm:$0xff]  ;;  %v105_v10 = vld [vmem:[#allocation5 + $0x60] sm:$0xff]  ;;  %v194_v11 = vld [vmem:[#allocation8 + $0x48] sm:$0xff]  ;;  %p656_p2 = scmp.lt.s32.totalorder %s407_s22, %s407_s22 }
  0x29   :  { %511 = vmatprep.subr.mxu1 %v682_v0  ;;  %476 = vmatprep.subr.mxu0 %v682_v0  ;;  %v104_v12 = vld [vmem:[#allocation5 + $0x58] sm:$0xff]  ;;  %v193_v13 = vld [vmem:[#allocation8 + $0x40] sm:$0xff]  ;;  %v103_v14 = vld [vmem:[#allocation5 + $0x50] sm:$0xff] }
  0x2a   :  { %512 = vmatpush3.msra.mxu1 %v199_v2  ;;  %477 = vmatpush3.msra.mxu0 %v107_v7  ;;  %v192_v15 = vld [vmem:[#allocation8 + $0x38] sm:$0xff]  ;;  %v102_v16 = vld [vmem:[#allocation5 + $0x48] sm:$0xff]  ;;  %v191_v17 = vld [vmem:[#allocation8 + $0x30] sm:$0xff] }
  0x2b   :  { %513 = vmatprep.subr.mxu1 %v682_v0  ;;  %478 = vmatprep.subr.mxu0 %v682_v0  ;;  %v101_v18 = vld [vmem:[#allocation5 + $0x40] sm:$0xff]  ;;  %v190_v19 = vld [vmem:[#allocation8 + $0x28] sm:$0xff]  ;;  %v100_v20 = vld [vmem:[#allocation5 + $0x38] sm:$0xff] }
  0x2c   :  { %514 = vmatpush3.msra.mxu1 %v198_v3  ;;  %479 = vmatpush3.msra.mxu0 %v106_v8  ;;  %v189_v21 = vld [vmem:[#allocation8 + $0x20] sm:$0xff]  ;;  %v99_v22 = vld [vmem:[#allocation5 + $0x30] sm:$0xff]  ;;  %v188_v23 = vld [vmem:[#allocation8 + $0x18] sm:$0xff] }
  0x2d   :  { %515 = vmatprep.subr.mxu1 %v682_v0  ;;  %480 = vmatprep.subr.mxu0 %v682_v0  ;;  %v98_v24 = vld [vmem:[#allocation5 + $0x28] sm:$0xff]  ;;  %v187_v25 = vld [vmem:[#allocation8 + $0x10] sm:$0xff]  ;;  %v97_v26 = vld [vmem:[#allocation5 + $0x20] sm:$0xff] }
  0x2e   :  { %516 = vmatpush3.msra.mxu1 %v197_v4  ;;  %481 = vmatpush3.msra.mxu0 %v105_v10  ;;  %v186_v27 = vld [vmem:[#allocation8 + $0x8] sm:$0xff]  ;;  %v96_v28 = vld [vmem:[#allocation5 + $0x18] sm:$0xff]  ;;  %v185_v29 = vld [vmem:[#allocation8] sm:$0xff] }
  0x2f   :  { %517 = vmatprep.subr.mxu1 %v682_v0  ;;  %482 = vmatprep.subr.mxu0 %v682_v0  ;;  %v91_v30 = vld [vmem:[%s803_s0] sm:$0xff]  ;;  %v95_v31 = vld [vmem:[#allocation5 + $0x10] sm:$0xff]  ;;  %v94_v32 = vld [vmem:[#allocation5 + $0x8] sm:$0xff] }
  0x30   :  { %518 = vmatpush3.msra.mxu1 %v196_v6  ;;  %483 = vmatpush3.msra.mxu0 %v104_v12  ;;  %v93_v33 = vld [vmem:[#allocation5] sm:$0xff]  ;;  %v305_v34 = vld [vmem:[#allocation10 + $0x78] sm:$0xff]  ;;  %v304_v35 = vld [vmem:[#allocation10 + $0x70] sm:$0xff] }
  0x31   :  { %519 = vmatprep.subr.mxu1 %v682_v0  ;;  %484 = vmatprep.subr.mxu0 %v682_v0  ;;  %v303_v36 = vld [vmem:[#allocation10 + $0x68] sm:$0xff]  ;;  %v302_v37 = vld [vmem:[#allocation10 + $0x60] sm:$0xff]  ;;  %v301_v38 = vld [vmem:[#allocation10 + $0x58] sm:$0xff] }
  0x32   :  { %520 = vmatpush3.msra.mxu1 %v195_v9  ;;  %485 = vmatpush3.msra.mxu0 %v103_v14  ;;  %v300_v39 = vld [vmem:[#allocation10 + $0x50] sm:$0xff]  ;;  %v299_v40 = vld [vmem:[#allocation10 + $0x48] sm:$0xff]  ;;  %v298_v41 = vld [vmem:[#allocation10 + $0x40] sm:$0xff] }
  0x33   :  { %521 = vmatprep.subr.mxu1 %v682_v0  ;;  %486 = vmatprep.subr.mxu0 %v682_v0  ;;  %v297_v42 = vld [vmem:[#allocation10 + $0x38] sm:$0xff]  ;;  %v296_v43 = vld [vmem:[#allocation10 + $0x30] sm:$0xff]  ;;  %v295_v44 = vld [vmem:[#allocation10 + $0x28] sm:$0xff] }
  0x34   :  { %522 = vmatpush3.msra.mxu1 %v194_v11  ;;  %487 = vmatpush3.msra.mxu0 %v102_v16  ;;  %v294_v45 = vld [vmem:[#allocation10 + $0x20] sm:$0xff]  ;;  %v293_v46 = vld [vmem:[#allocation10 + $0x18] sm:$0xff]  ;;  %v292_v47 = vld [vmem:[#allocation10 + $0x10] sm:$0xff] }
  0x35   :  { %523 = vmatprep.subr.mxu1 %v682_v0  ;;  %488 = vmatprep.subr.mxu0 %v682_v0  ;;  %v291_v48 = vld [vmem:[#allocation10 + $0x8] sm:$0xff]  ;;  %v290_v49 = vld [vmem:[#allocation10] sm:$0xff] }
  0x36   :  { %524 = vmatpush3.msra.mxu1 %v193_v13  ;;  %489 = vmatpush3.msra.mxu0 %v101_v18  ;;  %v419_v50 = vld [vmem:[%s807_s4] ss:$0 sm:$0xff] }
  0x37   :  { %525 = vmatprep.subr.mxu1 %v682_v0  ;;  %490 = vmatprep.subr.mxu0 %v682_v0  ;;  %v420_v57 = vld [vmem:[%s809_s6] ss:$0 sm:$0xff]  ;;  %s651_s6 = scalar_lea.vmem %s407_s22, 128 }
  0x38   :  { %526 = vmatpush3.msra.mxu1 %v192_v15  ;;  %491 = vmatpush3.msra.mxu0 %v100_v20  ;;  %p652_p1 = scmp.ne.s32.totalorder %s407_s22, %s651_s6  ;;  %p657_p3 = scmp.lt.s32.totalorder %s651_s6, %s651_s6 }
  0x39   :  { %527 = vmatprep.subr.mxu1 %v682_v0  ;;  %492 = vmatprep.subr.mxu0 %v682_v0 }
  0x3a   :  { %528 = vmatpush3.msra.mxu1 %v191_v17  ;;  %493 = vmatpush3.msra.mxu0 %v99_v22  ;;  %p658_p4 = por %p657_p3, %p656_p2 }
  0x3b   :  { %529 = vmatprep.subr.mxu1 %v682_v0  ;;  %494 = vmatprep.subr.mxu0 %v682_v0 }
  0x3c   :  { %530 = vmatpush3.msra.mxu1 %v190_v19  ;;  %495 = vmatpush3.msra.mxu0 %v98_v24  ;;  %p659_p5 = pnand %p658_p4, %p652_p1 }
  0x3d   :  { %531 = vmatprep.subr.mxu1 %v682_v0  ;;  %496 = vmatprep.subr.mxu0 %v682_v0 }
  0x3e   :  { %532 = vmatpush3.msra.mxu1 %v189_v21  ;;  %497 = vmatpush3.msra.mxu0 %v97_v26 }
  0x3f   :  { %533 = vmatprep.subr.mxu1 %v682_v0  ;;  %498 = vmatprep.subr.mxu0 %v682_v0 }
  0x40   :  { %534 = vmatpush3.msra.mxu1 %v188_v23  ;;  %499 = vmatpush3.msra.mxu0 %v96_v28 }
  0x41   :  { %535 = vmatprep.subr.mxu1 %v682_v0  ;;  %500 = vmatprep.subr.mxu0 %v682_v0 }
  0x42   :  { %536 = vmatpush3.msra.mxu1 %v187_v25  ;;  %501 = vmatpush3.msra.mxu0 %v95_v31 }
  0x43   :  { %537 = vmatprep.subr.mxu1 %v682_v0  ;;  %502 = vmatprep.subr.mxu0 %v682_v0 }
  0x44   :  { %538 = vmatpush3.msra.mxu1 %v186_v27  ;;  %503 = vmatpush3.msra.mxu0 %v94_v32 }
  0x45   :  { %539 = vmatprep.subr.mxu1 %v682_v0  ;;  %504 = vmatprep.subr.mxu0 %v682_v0 }
  0x46   :  { %540 = vmatpush3.msra.mxu1 %v185_v29  ;;  %505 = vmatpush3.msra.mxu0 %v93_v33 }
  0x47   :  { %542 = vmatmul.mubr.f32.vlgmr.msra.gmra.mxu1 %v91_v30  ;;  %507 = vmatmul.mubr.f32.vlgmr.msra.gmra.mxu0 %v91_v30 }
  0x48   :  { %544 = vmatprep.subr.mxu0 %v682_v0  ;;  %576 = vmatprep.mubr.msk.f32.mxu0 %vm683_vm0, %v682_v0 }
  0x49   :  { %545 = vmatpush3.msra.mxu0 %v305_v34 }
  0x4a   :  { %546 = vmatprep.subr.mxu0 %v682_v0 }
  0x4b   :  { %547 = vmatpush3.msra.mxu0 %v304_v35 }
  0x4c   :  { %548 = vmatprep.subr.mxu0 %v682_v0 }
  0x4d   :  { %549 = vmatpush3.msra.mxu0 %v303_v36 }
  0x4e   :  { %550 = vmatprep.subr.mxu0 %v682_v0 }
  0x4f   :  { %551 = vmatpush3.msra.mxu0 %v302_v37 }
  0x50   :  { %552 = vmatprep.subr.mxu0 %v682_v0 }
  0x51   :  { %553 = vmatpush3.msra.mxu0 %v301_v38 }
  0x52   :  { %554 = vmatprep.subr.mxu0 %v682_v0 }
  0x53   :  { %555 = vmatpush3.msra.mxu0 %v300_v39 }
  0x54   :  { %556 = vmatprep.subr.mxu0 %v682_v0 }
  0x55   :  { %557 = vmatpush3.msra.mxu0 %v299_v40 }
  0x56   :  { %558 = vmatprep.subr.mxu0 %v682_v0 }
  0x57   :  { %559 = vmatpush3.msra.mxu0 %v298_v41 }
  0x58   :  { %560 = vmatprep.subr.mxu0 %v682_v0 }
  0x59   :  { %561 = vmatpush3.msra.mxu0 %v297_v42 }
  0x5a   :  { %562 = vmatprep.subr.mxu0 %v682_v0 }
  0x5b   :  { %563 = vmatpush3.msra.mxu0 %v296_v43 }
  0x5c   :  { %564 = vmatprep.subr.mxu0 %v682_v0 }
  0x5d   :  { %565 = vmatpush3.msra.mxu0 %v295_v44 }
  0x5e   :  { %566 = vmatprep.subr.mxu0 %v682_v0 }
  0x5f   :  { %567 = vmatpush3.msra.mxu0 %v294_v45 }
  0x60   :  { %568 = vmatprep.subr.mxu0 %v682_v0 }
  0x61   :  { %569 = vmatpush3.msra.mxu0 %v293_v46 }
  0x62   :  { %570 = vmatprep.subr.mxu0 %v682_v0 }
  0x63   :  { %571 = vmatpush3.msra.mxu0 %v292_v47 }
  0x64   :  { %572 = vmatprep.subr.mxu0 %v682_v0 }
  0x65   :  { %573 = vmatpush3.msra.mxu0 %v291_v48 }
  0x66   :  { %574 = vmatprep.subr.mxu0 %v682_v0  ;;  %v422_v0 = vld [vmem:[%s805_s2] ss:$0 sm:$0xff] }
  0x67   :  { %575 = vmatpush3.msra.mxu0 %v290_v49 }
 0x107   :  { %v267_v51 = vpop.f32.mrf.mxu1  ;;  %v175_v55 = vpop.f32.mrf.mxu0 }
 0x108   :  { %v283_v52 = vadd.f32 %v419_v50, %v267_v51  ;;  %v397_v1 = vadd.f32 %v422_v0, %v175_v55 }
 0x109   :  { %v543_v53 = vpop.f32.mrf.mxu1  ;;  %v508_v56 = vpop.f32.mrf.mxu0 }
 0x10a   :  { %v284_v54 = vmax.f32 %v283_v52, 0.0 }
 0x10c   :  { %577 = vmatmul.mubr.f32.vlgmr.msra.gmra.mxu0 %v284_v54 }
 0x1cc   :  { %v379_v58 = vpop.f32.mrf.mxu0 }
 0x1cd   :  { %v380_v59 = vadd.f32 %v420_v57, %v379_v58 }
 0x1ce   :  { %v578_v60 = vpop.f32.mrf.mxu0 }
 0x1cf   :  { %v421_v61 = vmul.f32 -1.442695, %v380_v59 }
 0x1d1   :  { %587 = vpow2.f32 %v421_v61 }
 0x1de   :  { %v588_v62 = vpop.eup %587 }
 0x1df   :  { %v386_v63 = vadd.f32 1.0, %v588_v62 }
 0x1e1   :  { %589 = vrcp.f32 %v386_v63 }
 0x1ee   :  { %v590_v2 = vpop.eup %589 }
 0x1ef   :  { %v398_v3 = vmul.f32 %v590_v2, %v397_v1 }
 0x1f1   :  { %399 = vst [vmem:[#allocation11] sm:$0xff] %v398_v3 }
 0x1f2   :  { %662 = shalt.err (!%p659_p5)
}
 0x1f3   :  { %409 = dma.vmem_to_hbm [thread:$0]  %s407_s22, 128, %s810_s7, [#allocation7]  }
 0x1f4   :  { %675 = dma.done.wait [#allocation7], 128  }
 0x1f5   :  { %676 = vsyncadd [#allocation7], 4294967168 }
 0x1f6   :  { %413 = vsyncpa [#allocation6], 1 }
 0x1f7   :  { %414 = vsyncpa [#allocation9], 1 }
 0x1f8   :  { %415 = vsyncpa [#allocation7], 1 }

</bundles_post_ra>
